<compile_context>
chip_gen: v5e
topology: v5e:2x2
jax: 0.10.0
libtpu: 0.0.40
codegen_flags: <defaults>
</compile_context>

<pallas_src>
import functools

import jax
import jax.numpy as jnp
from jax.experimental import pallas as pl
from jax.experimental.pallas import tpu as pltpu


def _round_up(x, m):
    return (x + m - 1) // m * m


def _gcn_fused_kernel(a_ref, xk_ref, xi_ref, w_ref, b_ref, wr_ref, br_ref,
                      y_ref, s_ref, m2_ref, acc_ref,
                      *, tm, tk, fout_p, n_valid, x_resident, needs_mask):
    # All grid queries hoisted to the kernel top level (never inside pl.when).
    i = pl.program_id(0)
    k = pl.program_id(1)
    nk = pl.num_programs(1)

    @pl.when(k == 0)
    def _():
        acc_ref[...] = jnp.zeros_like(acc_ref)

    # Aggregation with self-loops: acc += A_hat[i, k] @ X[k]
    # A tile arrives as int8 (0/1) and is cast to bf16 on the VPU (hidden
    # under the A DMA); X is bf16; accumulate in f32.
    a_tile = a_ref[...].astype(jnp.bfloat16)
    if x_resident:
        x_tile = xk_ref[pl.ds(k * tk, tk), :]
    else:
        x_tile = xk_ref[...]
    acc_ref[...] += jnp.dot(a_tile, x_tile, preferred_element_type=jnp.float32)

    @pl.when(k == nk - 1)
    def _():
        # GraphConv projection + bias + ReLU (bf16 MXU path, f32 accumulate).
        agg = acc_ref[...].astype(jnp.bfloat16)                 # [tm, fin_p]
        h = jnp.dot(agg, w_ref[...],
                    preferred_element_type=jnp.float32) + b_ref[...]
        h = jnp.maximum(h, 0.0)
        # Residual branch: ReLU(Linear(x))
        r = jnp.dot(xi_ref[...], wr_ref[...],
                    preferred_element_type=jnp.float32) + br_ref[...]
        r = jnp.maximum(r, 0.0)
        y = h + r                                               # dropout(p=0) == identity
        y_ref[...] = y

        # Per-row-tile BatchNorm partial stats (centered per tile so the global
        # variance combine is Welford-style, not E[x^2]-mean^2).
        if needs_mask:
            row = i * tm + jax.lax.broadcasted_iota(jnp.int32, (tm, fout_p), 0)
            valid = row < n_valid
            ym = jnp.where(valid, y, 0.0)
            cnt = jnp.minimum(n_valid - i * tm, tm).astype(jnp.float32)
        else:
            ym = y
            cnt = jnp.float32(tm)
        s = jnp.sum(ym, axis=0, keepdims=True)                  # [1, fout_p]
        c = y - s / cnt
        if needs_mask:
            c = jnp.where(valid, c, 0.0)
        m2 = jnp.sum(c * c, axis=0, keepdims=True)              # [1, fout_p]

        sub = jax.lax.broadcasted_iota(jnp.int32, (8, fout_p), 0)
        s_ref[...] = jnp.where(sub == 0, s, 0.0)
        m2_ref[...] = jnp.where(sub == 0, m2, 0.0)


def _bn_apply_kernel(y_ref, scale_ref, shift_ref, o_ref):
    o_ref[...] = y_ref[...] * scale_ref[...] + shift_ref[...]


@jax.jit
def gcn_layer_forward(a_hat, x, w, b, w_res, b_res, gamma, beta):
    eps = 1e-5
    n, in_feats = x.shape
    out_feats = w.shape[1]

    fin_p = _round_up(in_feats, 128)
    fout_p = _round_up(out_feats, 128)

    # Row tile (multiple of 32 for int8 sublane tiling) and padded node count.
    tm = min(256, _round_up(n, 32))
    n_pad = _round_up(n, tm)
    n_tiles_m = n_pad // tm
    needs_mask = (n_pad != n)

    # Reduction (adjacency-column) tile: multiple of tm, divides n_pad, <= 512.
    f = 1
    while tm * (f * 2) <= 512 and n_tiles_m % (f * 2) == 0:
        f *= 2
    tk = tm * f
    n_tiles_k = n_pad // tk

    # A_hat as int8 (values are exactly 0/1).  Ideally the caller supplies it
    # already in int8 and pre-padded, making this pre-pass free.
    a_i8 = a_hat if a_hat.dtype == jnp.int8 else a_hat.astype(jnp.int8)
    if needs_mask:
        a_i8 = jnp.pad(a_i8, ((0, n_pad - n), (0, n_pad - n)))

    # Lane-dense padded operands.
    x_bf = jnp.pad(x, ((0, n_pad - n), (0, fin_p - in_feats))).astype(jnp.bfloat16)
    w_bf = jnp.pad(w, ((0, fin_p - in_feats), (0, fout_p - out_feats))).astype(jnp.bfloat16)
    wr_bf = jnp.pad(w_res, ((0, fin_p - in_feats), (0, fout_p - out_feats))).astype(jnp.bfloat16)
    b_p = jnp.pad(b.reshape(1, -1).astype(jnp.float32),
                  ((0, 0), (0, fout_p - out_feats)))
    br_p = jnp.pad(b_res.reshape(1, -1).astype(jnp.float32),
                   ((0, 0), (0, fout_p - out_feats)))

    # Keep X VMEM-resident when it fits a conservative budget (v7x-safe).
    x_resident = (n_pad * fin_p * 2) <= (8 << 20)
    if x_resident:
        xk_spec = pl.BlockSpec((n_pad, fin_p), lambda i, k: (0, 0))
    else:
        xk_spec = pl.BlockSpec((tk, fin_p), lambda i, k: (k, 0))

    kernel = functools.partial(
        _gcn_fused_kernel, tm=tm, tk=tk, fout_p=fout_p, n_valid=n,
        x_resident=x_resident, needs_mask=needs_mask)

    flops = 2 * n_pad * n_pad * fin_p + 4 * n_pad * fin_p * fout_p
    x_bytes = (n_pad * fin_p * 2 if x_resident else n_tiles_m * n_pad * fin_p * 2)
    bytes_accessed = (n_pad * n_pad                      # A_hat (int8)
                      + x_bytes + n_pad * fin_p * 2      # X agg + residual
                      + 2 * fin_p * fout_p * 2           # W, W_res (bf16)
                      + n_pad * fout_p * 4               # y written
                      + 2 * n_tiles_m * 8 * fout_p * 4)  # partial stats
    cost = pl.CostEstimate(flops=flops, transcendentals=0,
                           bytes_accessed=bytes_accessed)

    y_pad, sums, m2s = pl.pallas_call(
        kernel,
        out_shape=(
            jax.ShapeDtypeStruct((n_pad, fout_p), jnp.float32),
            jax.ShapeDtypeStruct((n_tiles_m * 8, fout_p), jnp.float32),
            jax.ShapeDtypeStruct((n_tiles_m * 8, fout_p), jnp.float32),
        ),
        grid_spec=pltpu.PrefetchScalarGridSpec(
            num_scalar_prefetch=0,
            grid=(n_tiles_m, n_tiles_k),
            in_specs=[
                pl.BlockSpec((tm, tk), lambda i, k: (i, k)),         # A_hat tile (int8)
                xk_spec,                                             # X (aggregation)
                pl.BlockSpec((tm, fin_p), lambda i, k: (i, 0)),      # X (residual)
                pl.BlockSpec((fin_p, fout_p), lambda i, k: (0, 0)),  # W     (resident)
                pl.BlockSpec((1, fout_p), lambda i, k: (0, 0)),      # b     (resident)
                pl.BlockSpec((fin_p, fout_p), lambda i, k: (0, 0)),  # W_res (resident)
                pl.BlockSpec((1, fout_p), lambda i, k: (0, 0)),      # b_res (resident)
            ],
            out_specs=[
                pl.BlockSpec((tm, fout_p), lambda i, k: (i, 0)),     # y
                pl.BlockSpec((8, fout_p), lambda i, k: (i, 0)),      # per-tile sum
                pl.BlockSpec((8, fout_p), lambda i, k: (i, 0)),      # per-tile M2
            ],
            scratch_shapes=[pltpu.VMEM((tm, fin_p), jnp.float32)],
        ),
        compiler_params=pltpu.CompilerParams(
            # Row axis parallel (k-axis reduction MUST stay innermost/arbitrary).
            dimension_semantics=("parallel", "arbitrary"),
            vmem_limit_bytes=48 * 1024 * 1024,
        ),
        cost_estimate=cost,
    )(a_i8, x_bf, x_bf, w_bf, b_p, wr_bf, br_p)

    # Welford-style combine of the per-tile (count, mean, M2) partials.
    sums_t = sums.reshape(n_tiles_m, 8, fout_p)[:, 0, :]     # [tiles, fout_p]
    m2_t = m2s.reshape(n_tiles_m, 8, fout_p)[:, 0, :]
    counts = jnp.minimum(
        jnp.float32(n) - jnp.arange(n_tiles_m, dtype=jnp.float32) * tm,
        jnp.float32(tm))
    n_f = jnp.float32(n)
    mean = jnp.sum(sums_t, axis=0, keepdims=True) / n_f
    tile_mean = sums_t / counts[:, None]
    m2_total = (jnp.sum(m2_t, axis=0, keepdims=True)
                + jnp.sum(counts[:, None] * (tile_mean - mean) ** 2,
                          axis=0, keepdims=True))
    var = m2_total / n_f                                      # biased, as BN training mode
    inv_std = jax.lax.rsqrt(var + eps)
    gamma_p = jnp.pad(gamma.reshape(1, -1).astype(jnp.float32),
                      ((0, 0), (0, fout_p - out_feats)))
    beta_p = jnp.pad(beta.reshape(1, -1).astype(jnp.float32),
                     ((0, 0), (0, fout_p - out_feats)))
    scale = gamma_p * inv_std
    shift = beta_p - mean * scale

    # BN-apply: mem-bound elementwise pass; large row blocks, y aliased to out.
    bn_rows = tm
    while bn_rows * 2 <= min(n_pad, 2048) and n_pad % (bn_rows * 2) == 0:
        bn_rows *= 2
    out_pad = pl.pallas_call(
        _bn_apply_kernel,
        out_shape=jax.ShapeDtypeStruct((n_pad, fout_p), jnp.float32),
        grid_spec=pltpu.PrefetchScalarGridSpec(
            num_scalar_prefetch=0,
            grid=(n_pad // bn_rows,),
            in_specs=[
                pl.BlockSpec((bn_rows, fout_p), lambda i: (i, 0)),
                pl.BlockSpec((1, fout_p), lambda i: (0, 0)),
                pl.BlockSpec((1, fout_p), lambda i: (0, 0)),
            ],
            out_specs=pl.BlockSpec((bn_rows, fout_p), lambda i: (i, 0)),
        ),
        compiler_params=pltpu.CompilerParams(
            dimension_semantics=("parallel",)),
        input_output_aliases={0: 0},
    )(y_pad, scale, shift)

    return out_pad[:n, :out_feats]


if __name__ == "__main__":
    key = jax.random.PRNGKey(0)
    k_adj, k_x, k_w, k_b, k_wr, k_br = jax.random.split(key, 6)

    # Small graph: N nodes, in_feats -> out_feats
    N, in_feats, out_feats = 16, 8, 32

    # Random undirected adjacency + self-loops (dgl.add_self_loop equivalent).
    logits = jax.random.uniform(k_adj, (N, N))
    adj = (logits + logits.T > 1.2).astype(jnp.float32)
    a_hat = jnp.minimum(adj + jnp.eye(N, dtype=jnp.float32), 1.0)

    # Node features.
    x = jax.random.normal(k_x, (N, in_feats), dtype=jnp.float32)

    # GraphConv weight/bias.
    w = jax.random.normal(k_w, (in_feats, out_feats), dtype=jnp.float32) * 0.1
    b = jax.random.normal(k_b, (1, out_feats), dtype=jnp.float32) * 0.1

    # Residual nn.Linear(in_feats, out_feats) weight/bias.
    w_res = jax.random.normal(k_wr, (in_feats, out_feats), dtype=jnp.float32) * 0.1
    b_res = jax.random.normal(k_br, (1, out_feats), dtype=jnp.float32) * 0.1

    # BatchNorm1d affine params (default init: gamma=1, beta=0).
    gamma = jnp.ones((1, out_feats), dtype=jnp.float32)
    beta = jnp.zeros((1, out_feats), dtype=jnp.float32)

    out = gcn_layer_forward(a_hat, x, w, b, w_res, b_res, gamma, beta)
    jax.block_until_ready(out)
    assert out.shape == (N, out_feats)

    # Pure-JAX f32 reference (kernel uses bf16 for the aggregation/projections).
    h_ref = jnp.maximum(a_hat @ (x @ w) + b, 0.0)
    r_ref = jnp.maximum(x @ w_res + b_res, 0.0)
    y_ref = h_ref + r_ref
    m = y_ref.mean(axis=0, keepdims=True)
    v = ((y_ref - m) ** 2).mean(axis=0, keepdims=True)
    ref = (y_ref - m) / jnp.sqrt(v + 1e-5) * gamma + beta
    assert jnp.allclose(out, ref, atol=2e-2, rtol=2e-2), "mismatch vs reference"

    # TODO(synk): BatchNorm1d running_mean/running_var training-state updates are
    # not reproduced (forward output only).
    print("KERNEL_OK")
</pallas_src>

<mosaic_0001>
module attributes {stable_mosaic.version = 11 : i64} {
  func.func @_bn_apply_kernel(%arg0: i32, %arg1: memref<32x128xf32, #tpu.memory_space<vmem>>, %arg2: memref<1x128xf32, #tpu.memory_space<vmem>>, %arg3: memref<1x128xf32, #tpu.memory_space<vmem>>, %arg4: memref<32x128xf32, #tpu.memory_space<vmem>>) attributes {dimension_semantics = [#tpu.dimension_semantics<parallel>], iteration_bounds = array<i64: 1>, scalar_prefetch = 0 : i64, scratch_operands = 0 : i64, tpu.core_type = #tpu.core_type<tc>, window_params = [{transform_indices = @transform_0, window_bounds = array<i64: 32, 128>}, {pipeline_mode = #tpu.pipeline_mode<synchronous>, transform_indices = @transform_1, window_bounds = array<i64: 1, 128>}, {pipeline_mode = #tpu.pipeline_mode<synchronous>, transform_indices = @transform_2, window_bounds = array<i64: 1, 128>}, {transform_indices = @transform_3, window_bounds = array<i64: 32, 128>}]} {
    %c0 = arith.constant 0 : index
    %c0_0 = arith.constant 0 : index
    %0 = vector.load %arg1[%c0, %c0_0] : memref<32x128xf32, #tpu.memory_space<vmem>>, vector<32x128xf32>
    %c0_1 = arith.constant 0 : index
    %c0_2 = arith.constant 0 : index
    %1 = vector.load %arg2[%c0_1, %c0_2] : memref<1x128xf32, #tpu.memory_space<vmem>>, vector<1x128xf32>
    %2 = vector.broadcast %1 : vector<1x128xf32> to vector<32x128xf32>
    %3 = arith.mulf %0, %2 : vector<32x128xf32>
    %c0_3 = arith.constant 0 : index
    %c0_4 = arith.constant 0 : index
    %4 = vector.load %arg3[%c0_3, %c0_4] : memref<1x128xf32, #tpu.memory_space<vmem>>, vector<1x128xf32>
    %5 = vector.broadcast %4 : vector<1x128xf32> to vector<32x128xf32>
    %6 = arith.addf %3, %5 : vector<32x128xf32>
    %c0_5 = arith.constant 0 : index
    %c0_6 = arith.constant 0 : index
    %7 = vector.load %arg4[%c0_5, %c0_6] : memref<32x128xf32, #tpu.memory_space<vmem>>, vector<32x128xf32>
    tpu.vector_store %arg4[%c0_5, %c0_6], %6 {strides = array<i32>} : memref<32x128xf32, #tpu.memory_space<vmem>>, vector<32x128xf32>,
    return
  }
  func.func @transform_0(%arg0: i32) -> (i32, i32) {
    %c0_i32 = arith.constant 0 : i32
    %c0_i32_0 = arith.constant 0 : i32
    return %arg0, %c0_i32 : i32, i32
  }
  func.func @transform_1(%arg0: i32) -> (i32, i32) {
    %c0_i32 = arith.constant 0 : i32
    %c0_i32_0 = arith.constant 0 : i32
    %c0_i32_1 = arith.constant 0 : i32
    return %c0_i32, %c0_i32_0 : i32, i32
  }
  func.func @transform_2(%arg0: i32) -> (i32, i32) {
    %c0_i32 = arith.constant 0 : i32
    %c0_i32_0 = arith.constant 0 : i32
    %c0_i32_1 = arith.constant 0 : i32
    return %c0_i32, %c0_i32_0 : i32, i32
  }
  func.func @transform_3(%arg0: i32) -> (i32, i32) {
    %c0_i32 = arith.constant 0 : i32
    %c0_i32_0 = arith.constant 0 : i32
    return %arg0, %c0_i32 : i32, i32
  }
}

module attributes {stable_mosaic.version = 11 : i64} {
  func.func @_gcn_fused_kernel(%arg0: i32, %arg1: i32, %arg2: memref<32x32xi8, #tpu.memory_space<vmem>>, %arg3: memref<32x128xbf16, #tpu.memory_space<vmem>>, %arg4: memref<32x128xbf16, #tpu.memory_space<vmem>>, %arg5: memref<128x128xbf16, #tpu.memory_space<vmem>>, %arg6: memref<1x128xf32, #tpu.memory_space<vmem>>, %arg7: memref<128x128xbf16, #tpu.memory_space<vmem>>, %arg8: memref<1x128xf32, #tpu.memory_space<vmem>>, %arg9: memref<32x128xf32, #tpu.memory_space<vmem>>, %arg10: memref<8x128xf32, #tpu.memory_space<vmem>>, %arg11: memref<8x128xf32, #tpu.memory_space<vmem>>, %arg12: memref<32x128xf32, #tpu.memory_space<vmem>>) attributes {dimension_semantics = [#tpu.dimension_semantics<parallel>, #tpu.dimension_semantics<arbitrary>], iteration_bounds = array<i64: 1, 1>, scalar_prefetch = 0 : i64, scratch_operands = 1 : i64, tpu.core_type = #tpu.core_type<tc>, window_params = [{transform_indices = @transform_0, window_bounds = array<i64: 32, 32>}, {pipeline_mode = #tpu.pipeline_mode<synchronous>, transform_indices = @transform_1, window_bounds = array<i64: 32, 128>}, {transform_indices = @transform_2, window_bounds = array<i64: 32, 128>}, {pipeline_mode = #tpu.pipeline_mode<synchronous>, transform_indices = @transform_3, window_bounds = array<i64: 128, 128>}, {pipeline_mode = #tpu.pipeline_mode<synchronous>, transform_indices = @transform_4, window_bounds = array<i64: 1, 128>}, {pipeline_mode = #tpu.pipeline_mode<synchronous>, transform_indices = @transform_5, window_bounds = array<i64: 128, 128>}, {pipeline_mode = #tpu.pipeline_mode<synchronous>, transform_indices = @transform_6, window_bounds = array<i64: 1, 128>}, {transform_indices = @transform_7, window_bounds = array<i64: 32, 128>}, {transform_indices = @transform_8, window_bounds = array<i64: 8, 128>}, {transform_indices = @transform_9, window_bounds = array<i64: 8, 128>}]} {
    %c0_i32 = arith.constant 0 : i32
    %0 = arith.cmpi eq, %arg1, %c0_i32 : i32
    %1 = arith.extui %0 : i1 to i32
    %c0_i32_0 = arith.constant 0 : i32
    %2 = arith.cmpi ne, %1, %c0_i32_0 : i32
    scf.if %2 {
      %cst_9 = arith.constant 0.000000e+00 : f32
      %15 = vector.broadcast %cst_9 : f32 to vector<32x128xf32>
      %c0_10 = arith.constant 0 : index
      %c0_11 = arith.constant 0 : index
      %16 = vector.load %arg12[%c0_10, %c0_11] : memref<32x128xf32, #tpu.memory_space<vmem>>, vector<32x128xf32>
      tpu.vector_store %arg12[%c0_10, %c0_11], %15 {strides = array<i32>} : memref<32x128xf32, #tpu.memory_space<vmem>>, vector<32x128xf32>,
    } else {
    }
    %c0 = arith.constant 0 : index
    %c0_1 = arith.constant 0 : index
    %3 = vector.load %arg2[%c0, %c0_1] : memref<32x32xi8, #tpu.memory_space<vmem>>, vector<32x32xi8>
    %4 = arith.sitofp %3 : vector<32x32xi8> to vector<32x32xbf16>
    %c32_i32 = arith.constant 32 : i32
    %5 = arith.muli %arg1, %c32_i32 : i32
    %6 = arith.index_cast %5 : i32 to index
    %c0_2 = arith.constant 0 : index
    %7 = vector.load %arg3[%6, %c0_2] : memref<32x128xbf16, #tpu.memory_space<vmem>>, vector<32x128xbf16>
    %c0_3 = arith.constant 0 : index
    %c0_4 = arith.constant 0 : index
    %8 = vector.load %arg12[%c0_3, %c0_4] : memref<32x128xf32, #tpu.memory_space<vmem>>, vector<32x128xf32>
    %cst = arith.constant dense<0.000000e+00> : vector<32x128xf32>
    %9 = tpu.matmul %4, %7, %cst {dimension_numbers = #tpu.dot_dimension_numbers<[1], [0], [0], [1], [0, 0, 1, 1], [], []>} : vector<32x32xbf16>, vector<32x128xbf16>, vector<32x128xf32> -> vector<32x128xf32>
    %10 = arith.addf %8, %9 : vector<32x128xf32>
    %c0_5 = arith.constant 0 : index
    %c0_6 = arith.constant 0 : index
    %11 = vector.load %arg12[%c0_5, %c0_6] : memref<32x128xf32, #tpu.memory_space<vmem>>, vector<32x128xf32>
    tpu.vector_store %arg12[%c0_5, %c0_6], %10 {strides = array<i32>} : memref<32x128xf32, #tpu.memory_space<vmem>>, vector<32x128xf32>,
    %c0_i32_7 = arith.constant 0 : i32
    %12 = arith.cmpi eq, %arg1, %c0_i32_7 : i32
    %13 = arith.extui %12 : i1 to i32
    %c0_i32_8 = arith.constant 0 : i32
    %14 = arith.cmpi ne, %13, %c0_i32_8 : i32
    scf.if %14 {
      %c0_9 = arith.constant 0 : index
      %c0_10 = arith.constant 0 : index
      %15 = vector.load %arg12[%c0_9, %c0_10] : memref<32x128xf32, #tpu.memory_space<vmem>>, vector<32x128xf32>
      %16 = arith.truncf %15 : vector<32x128xf32> to vector<32x128xbf16>
      %c0_11 = arith.constant 0 : index
      %c0_12 = arith.constant 0 : index
      %17 = vector.load %arg5[%c0_11, %c0_12] : memref<128x128xbf16, #tpu.memory_space<vmem>>, vector<128x128xbf16>
      %cst_13 = arith.constant dense<0.000000e+00> : vector<32x128xf32>
      %18 = tpu.matmul %16, %17, %cst_13 {dimension_numbers = #tpu.dot_dimension_numbers<[1], [0], [0], [1], [0, 0, 1, 1], [], []>} : vector<32x128xbf16>, vector<128x128xbf16>, vector<32x128xf32> -> vector<32x128xf32>
      %c0_14 = arith.constant 0 : index
      %c0_15 = arith.constant 0 : index
      %19 = vector.load %arg6[%c0_14, %c0_15] : memref<1x128xf32, #tpu.memory_space<vmem>>, vector<1x128xf32>
      %20 = vector.broadcast %19 : vector<1x128xf32> to vector<32x128xf32>
      %21 = arith.addf %18, %20 : vector<32x128xf32>
      %cst_16 = arith.constant 0.000000e+00 : f32
      %22 = vector.broadcast %cst_16 : f32 to vector<32x128xf32>
      %23 = arith.maximumf %21, %22 : vector<32x128xf32>
      %c0_17 = arith.constant 0 : index
      %c0_18 = arith.constant 0 : index
      %24 = vector.load %arg4[%c0_17, %c0_18] : memref<32x128xbf16, #tpu.memory_space<vmem>>, vector<32x128xbf16>
      %c0_19 = arith.constant 0 : index
      %c0_20 = arith.constant 0 : index
      %25 = vector.load %arg7[%c0_19, %c0_20] : memref<128x128xbf16, #tpu.memory_space<vmem>>, vector<128x128xbf16>
      %cst_21 = arith.constant dense<0.000000e+00> : vector<32x128xf32>
      %26 = tpu.matmul %24, %25, %cst_21 {dimension_numbers = #tpu.dot_dimension_numbers<[1], [0], [0], [1], [0, 0, 1, 1], [], []>} : vector<32x128xbf16>, vector<128x128xbf16>, vector<32x128xf32> -> vector<32x128xf32>
      %c0_22 = arith.constant 0 : index
      %c0_23 = arith.constant 0 : index
      %27 = vector.load %arg8[%c0_22, %c0_23] : memref<1x128xf32, #tpu.memory_space<vmem>>, vector<1x128xf32>
      %28 = vector.broadcast %27 : vector<1x128xf32> to vector<32x128xf32>
      %29 = arith.addf %26, %28 : vector<32x128xf32>
      %cst_24 = arith.constant 0.000000e+00 : f32
      %30 = vector.broadcast %cst_24 : f32 to vector<32x128xf32>
      %31 = arith.maximumf %29, %30 : vector<32x128xf32>
      %32 = arith.addf %23, %31 : vector<32x128xf32>
      %c0_25 = arith.constant 0 : index
      %c0_26 = arith.constant 0 : index
      %33 = vector.load %arg9[%c0_25, %c0_26] : memref<32x128xf32, #tpu.memory_space<vmem>>, vector<32x128xf32>
      tpu.vector_store %arg9[%c0_25, %c0_26], %32 {strides = array<i32>} : memref<32x128xf32, #tpu.memory_space<vmem>>, vector<32x128xf32>,
      %c32_i32_27 = arith.constant 32 : i32
      %34 = arith.muli %arg0, %c32_i32_27 : i32
      %35 = tpu.iota {dimensions = array<i32: 0>} : vector<32x128xi32>
      %36 = vector.broadcast %34 : i32 to vector<32x128xi32>
      %37 = arith.addi %36, %35 : vector<32x128xi32>
      %c16_i32 = arith.constant 16 : i32
      %38 = vector.broadcast %c16_i32 : i32 to vector<32x128xi32>
      %39 = arith.cmpi slt, %37, %38 : vector<32x128xi32>
      %cst_28 = arith.constant 0.000000e+00 : f32
      %40 = vector.broadcast %cst_28 : f32 to vector<32x128xf32>
      %41 = arith.select %39, %32, %40 : vector<32x128xi1>, vector<32x128xf32>
      %c32_i32_29 = arith.constant 32 : i32
      %42 = arith.muli %arg0, %c32_i32_29 : i32
      %c16_i32_30 = arith.constant 16 : i32
      %43 = arith.subi %c16_i32_30, %42 : i32
      %c32_i32_31 = arith.constant 32 : i32
      %44 = arith.minsi %43, %c32_i32_31 : i32
      %45 = arith.sitofp %44 : i32 to f32
      %cst_32 = arith.constant dense<0.000000e+00> : vector<128xf32>
      %46 = vector.multi_reduction <add>, %41, %cst_32 [0] : vector<32x128xf32> to vector<128xf32>
      %47 = vector.shape_cast %46 : vector<128xf32> to vector<1x128xf32>
      %48 = vector.broadcast %45 : f32 to vector<1x128xf32>
      %49 = arith.divf %47, %48 : vector<1x128xf32>
      %50 = vector.broadcast %49 : vector<1x128xf32> to vector<32x128xf32>
      %51 = arith.subf %32, %50 : vector<32x128xf32>
      %cst_33 = arith.constant 0.000000e+00 : f32
      %52 = vector.broadcast %cst_33 : f32 to vector<32x128xf32>
      %53 = arith.select %39, %51, %52 : vector<32x128xi1>, vector<32x128xf32>
      %54 = arith.mulf %53, %53 : vector<32x128xf32>
      %cst_34 = arith.constant dense<0.000000e+00> : vector<128xf32>
      %55 = vector.multi_reduction <add>, %54, %cst_34 [0] : vector<32x128xf32> to vector<128xf32>
      %56 = vector.shape_cast %55 : vector<128xf32> to vector<1x128xf32>
      %57 = tpu.iota {dimensions = array<i32: 0>} : vector<8x128xi32>
      %c0_i32_35 = arith.constant 0 : i32
      %58 = vector.broadcast %c0_i32_35 : i32 to vector<8x128xi32>
      %59 = arith.cmpi eq, %57, %58 : vector<8x128xi32>
      %cst_36 = arith.constant 0.000000e+00 : f32
      %60 = vector.shape_cast %47 : vector<1x128xf32> to vector<1x128xf32>
      %61 = vector.broadcast %60 : vector<1x128xf32> to vector<8x128xf32>
      %62 = vector.broadcast %cst_36 : f32 to vector<8x128xf32>
      %63 = arith.select %59, %61, %62 : vector<8x128xi1>, vector<8x128xf32>
      %c0_37 = arith.constant 0 : index
      %c0_38 = arith.constant 0 : index
      %64 = vector.load %arg10[%c0_37, %c0_38] : memref<8x128xf32, #tpu.memory_space<vmem>>, vector<8x128xf32>
      tpu.vector_store %arg10[%c0_37, %c0_38], %63 {strides = array<i32>} : memref<8x128xf32, #tpu.memory_space<vmem>>, vector<8x128xf32>,
      %c0_i32_39 = arith.constant 0 : i32
      %65 = vector.broadcast %c0_i32_39 : i32 to vector<8x128xi32>
      %66 = arith.cmpi eq, %57, %65 : vector<8x128xi32>
      %cst_40 = arith.constant 0.000000e+00 : f32
      %67 = vector.shape_cast %56 : vector<1x128xf32> to vector<1x128xf32>
      %68 = vector.broadcast %67 : vector<1x128xf32> to vector<8x128xf32>
      %69 = vector.broadcast %cst_40 : f32 to vector<8x128xf32>
      %70 = arith.select %66, %68, %69 : vector<8x128xi1>, vector<8x128xf32>
      %c0_41 = arith.constant 0 : index
      %c0_42 = arith.constant 0 : index
      %71 = vector.load %arg11[%c0_41, %c0_42] : memref<8x128xf32, #tpu.memory_space<vmem>>, vector<8x128xf32>
      tpu.vector_store %arg11[%c0_41, %c0_42], %70 {strides = array<i32>} : memref<8x128xf32, #tpu.memory_space<vmem>>, vector<8x128xf32>,
    } else {
    }
    return
  }
  func.func @transform_0(%arg0: i32, %arg1: i32) -> (i32, i32) {
    %c0_i32 = arith.constant 0 : i32
    return %arg0, %arg1 : i32, i32
  }
  func.func @transform_1(%arg0: i32, %arg1: i32) -> (i32, i32) {
    %c0_i32 = arith.constant 0 : i32
    %c0_i32_0 = arith.constant 0 : i32
    %c0_i32_1 = arith.constant 0 : i32
    return %c0_i32, %c0_i32_0 : i32, i32
  }
  func.func @transform_2(%arg0: i32, %arg1: i32) -> (i32, i32) {
    %c0_i32 = arith.constant 0 : i32
    %c0_i32_0 = arith.constant 0 : i32
    return %arg0, %c0_i32 : i32, i32
  }
  func.func @transform_3(%arg0: i32, %arg1: i32) -> (i32, i32) {
    %c0_i32 = arith.constant 0 : i32
    %c0_i32_0 = arith.constant 0 : i32
    %c0_i32_1 = arith.constant 0 : i32
    return %c0_i32, %c0_i32_0 : i32, i32
  }
  func.func @transform_4(%arg0: i32, %arg1: i32) -> (i32, i32) {
    %c0_i32 = arith.constant 0 : i32
    %c0_i32_0 = arith.constant 0 : i32
    %c0_i32_1 = arith.constant 0 : i32
    return %c0_i32, %c0_i32_0 : i32, i32
  }
  func.func @transform_5(%arg0: i32, %arg1: i32) -> (i32, i32) {
    %c0_i32 = arith.constant 0 : i32
    %c0_i32_0 = arith.constant 0 : i32
    %c0_i32_1 = arith.constant 0 : i32
    return %c0_i32, %c0_i32_0 : i32, i32
  }
  func.func @transform_6(%arg0: i32, %arg1: i32) -> (i32, i32) {
    %c0_i32 = arith.constant 0 : i32
    %c0_i32_0 = arith.constant 0 : i32
    %c0_i32_1 = arith.constant 0 : i32
    return %c0_i32, %c0_i32_0 : i32, i32
  }
  func.func @transform_7(%arg0: i32, %arg1: i32) -> (i32, i32) {
    %c0_i32 = arith.constant 0 : i32
    %c0_i32_0 = arith.constant 0 : i32
    return %arg0, %c0_i32 : i32, i32
  }
  func.func @transform_8(%arg0: i32, %arg1: i32) -> (i32, i32) {
    %c0_i32 = arith.constant 0 : i32
    %c0_i32_0 = arith.constant 0 : i32
    return %arg0, %c0_i32 : i32, i32
  }
  func.func @transform_9(%arg0: i32, %arg1: i32) -> (i32, i32) {
    %c0_i32 = arith.constant 0 : i32
    %c0_i32_0 = arith.constant 0 : i32
    return %arg0, %c0_i32 : i32, i32
  }
}

</mosaic_0001>

<bundles_post_ra>
// kernel: gcn_layer_forward.3
= control target key start
LH: loop header
LB: loop body
LE: loop exit
PB: predicated region body
PF: predicated region fallthrough
CT: control target
= control target key end

     0   :  { %s94_s0 = inlined_call_operand.vmem [shape: f32[32,128], index: 0, kind: input, shape index: {}, may-alias: {0,3}]   ;;  %s95_s1 = inlined_call_operand.vmem [shape: f32[1,128], index: 1, kind: input, shape index: {}]   ;;  %s96_s2 = inlined_call_operand.vmem [shape: f32[1,128], index: 2, kind: input, shape index: {}]   ;;  %s97_s3 = inlined_call_operand.vmem [shape: f32[32,128], index: 3, kind: output, shape index: {}, may-alias: {0,3}]  }
   0x1   :  { %v14_v0 = vld [vmem:[%s94_s0] sm:$0xff]  ;;  %v15_v3 = vld [vmem:[%s94_s0 + $0x8] sm:$0xff]  ;;  %v16_v6 = vld [vmem:[%s94_s0 + $0x10] sm:$0xff] }
   0x2   :  { %v42_v1 = vld [vmem:[%s95_s1] ss:$0 sm:$0xff]  ;;  %v17_v7 = vld [vmem:[%s94_s0 + $0x18] sm:$0xff] }
   0x3   :  { %v43_v2 = vld [vmem:[%s96_s2] ss:$0 sm:$0xff]  ;;  %v22_v4 = vmul.f32 %v42_v1, %v14_v0  ;;  %v23_v5 = vmul.f32 %v42_v1, %v15_v3  ;;  %v24_v8 = vmul.f32 %v42_v1, %v16_v6  ;;  %v25_v9 = vmul.f32 %v42_v1, %v17_v7 }
   0x5   :  { %v30_v10 = vadd.f32 %v43_v2, %v22_v4  ;;  %v31_v11 = vadd.f32 %v43_v2, %v23_v5  ;;  %v32_v12 = vadd.f32 %v43_v2, %v24_v8  ;;  %v33_v13 = vadd.f32 %v43_v2, %v25_v9 }
   0x7   :  { %34 = vst [vmem:[%s97_s3] sm:$0xff] %v30_v10 }
   0x8   :  { %35 = vst [vmem:[%s97_s3 + $0x8] sm:$0xff] %v31_v11 }
   0x9   :  { %36 = vst [vmem:[%s97_s3 + $0x10] sm:$0xff] %v32_v12 }
   0xa   :  { %37 = vst [vmem:[%s97_s3 + $0x18] sm:$0xff] %v33_v13 }

// kernel: gcn_layer_forward.2
= control target key start
LH: loop header
LB: loop body
LE: loop exit
PB: predicated region body
PF: predicated region fallthrough
CT: control target
= control target key end

     0   :  { %vm74_vm0 = vcmask 261120   ;;  %v534_v44 = vmov 16.0   ;;  %v324_v60 = vlaneseq  ;;  %s676_s1 = inlined_call_operand.vmem [shape: bf16[32,128], index: 1, kind: input, shape index: {}, may-alias: {1,2}]   ;;  %s677_s0 = inlined_call_operand.vmem [shape: s8[32,32], index: 0, kind: input, shape index: {}]   ;;  %s678_s5 = inlined_call_operand.vmem [shape: bf16[128,128], index: 5, kind: input, shape index: {}]   ;;  %s679_s3 = inlined_call_operand.vmem [shape: bf16[128,128], index: 3, kind: input, shape index: {}]   ;;  %s680_s6 = inlined_call_operand.vmem [shape: f32[1,128], index: 6, kind: input, shape index: {}]   ;;  %s681_s2 = inlined_call_operand.vmem [shape: bf16[32,128], index: 2, kind: input, shape index: {}, may-alias: {1,2}]   ;;  %s682_s4 = inlined_call_operand.vmem [shape: f32[1,128], index: 4, kind: input, shape index: {}]   ;;  %s683_s7 = inlined_call_operand.vmem [shape: f32[32,128], index: 7, kind: output, shape index: {0}]   ;;  %s684_s8 = inlined_call_operand.vmem [shape: f32[8,128], index: 8, kind: output, shape index: {1}]   ;;  %s685_s9 = inlined_call_operand.vmem [shape: f32[8,128], index: 9, kind: output, shape index: {2}]  }
   0x1   :  { %v494_v0 = vld [vmem:[%s676_s1 + $0x8] sm:$0xff]  ;;  %v38_v1 = vld [vmem:[%s677_s0] sm:$0xff]  ;;  %v502_v4 = vld [vmem:[%s679_s3 + $0x38] sm:$0xff]  ;;  %532 = vrcp.f32 %v534_v44 }
   0x2   :  { %v39_v2 = vunpack.c.0.s8 %v38_v1  ;;  %v40_v3 = vunpack.c.1.s8 %v38_v1  ;;  %87 = vmatpush.bf16.msra.mxu0 %v494_v0  ;;  %v493_v5 = vld [vmem:[%s676_s1] sm:$0xff]  ;;  %v512_v6 = vld [vmem:[%s678_s5 + $0x38] sm:$0xff]  ;;  %185 = vmatpush.bf16.msra.mxu1 %v502_v4  ;;  %v501_v9 = vld [vmem:[%s679_s3 + $0x30] sm:$0xff]  ;;  %v41_v15 = vunpack.c.2.s8 %v38_v1  ;;  %v42_v16 = vunpack.c.3.s8 %v38_v1 }
   0x3   :  { %513 = vmatpush.bf16.msra.mxu3 %v502_v4  ;;  %521 = vmatpush.bf16.msra.mxu2 %v512_v6  ;;  %v511_v11 = vld [vmem:[%s678_s5 + $0x30] sm:$0xff]  ;;  %v500_v12 = vld [vmem:[%s679_s3 + $0x28] sm:$0xff]  ;;  %v499_v14 = vld [vmem:[%s679_s3 + $0x20] sm:$0xff]  ;;  %v325_v1 = vshrl.u32 %v324_v60, 7 }
   0x4   :  { %v43_v7 = vcvt.s32.f32 %v39_v2  ;;  %v44_v8 = vcvt.s32.f32 %v40_v3  ;;  %v510_v13 = vld [vmem:[%s678_s5 + $0x28] sm:$0xff]  ;;  %v509_v17 = vld [vmem:[%s678_s5 + $0x20] sm:$0xff]  ;;  %v498_v18 = vld [vmem:[%s679_s3 + $0x18] sm:$0xff]  ;;  %v45_v19 = vcvt.s32.f32 %v41_v15  ;;  %v46_v20 = vcvt.s32.f32 %v42_v16 }
   0x5   :  { %v508_v21 = vld [vmem:[%s678_s5 + $0x18] sm:$0xff]  ;;  %v507_v23 = vld [vmem:[%s678_s5 + $0x10] sm:$0xff]  ;;  %v506_v24 = vld [vmem:[%s678_s5 + $0x8] sm:$0xff]  ;;  %vm392_vm2 = vcmp.eq.s32.totalorder %v325_v1, 0 }
   0x6   :  { %v47_v10 = vpack.c.bf16 %v44_v8, %v43_v7  ;;  %88 = vmatpush.bf16.msra.mxu0 %v493_v5  ;;  %186 = vmatpush.bf16.msra.mxu1 %v501_v9  ;;  %v48_v22 = vpack.c.bf16 %v46_v20, %v45_v19  ;;  %v497_v25 = vld [vmem:[%s679_s3 + $0x10] sm:$0xff]  ;;  %v505_v26 = vld [vmem:[%s678_s5] sm:$0xff]  ;;  %v496_v28 = vld [vmem:[%s679_s3 + $0x8] sm:$0xff] }
   0x7   :  { %514 = vmatpush.bf16.msra.mxu3 %v501_v9  ;;  %522 = vmatpush.bf16.msra.mxu2 %v511_v11  ;;  %v503_v27 = vld [vmem:[%s681_s2] sm:$0xff]  ;;  %v504_v30 = vld [vmem:[%s681_s2 + $0x8] sm:$0xff]  ;;  %v533_v48 = vpop.eup %532 }
   0x8   :  { %v495_v29 = vld [vmem:[%s679_s3] sm:$0xff]  ;;  %v357_v52 = vmul.f32 16.0, %v533_v48  ;;  %vm362_vm1 = vweird.f32 %v533_v48 }
   0x9   :  { %419 = vmatmul.msk.bf16.vlgmr.msra.gmra.mxu0 %vm74_vm0, %v47_v10  ;;  %v530_v37 = vld [vmem:[%s680_s6] ss:$0 sm:$0xff] }
   0xa   :  { %292 = vmatpush.bf16.msrb.mxu0 %v512_v6  ;;  %187 = vmatpush.bf16.msra.mxu1 %v500_v12  ;;  %v531_v40 = vld [vmem:[%s682_s4] ss:$0 sm:$0xff]  ;;  %v358_v56 = vsub.f32 1.0, %v357_v52 }
   0xb   :  { %515 = vmatpush.bf16.msra.mxu3 %v500_v12  ;;  %523 = vmatpush.bf16.msra.mxu2 %v510_v13 }
   0xc   :  { %v359_v61 = vmul.f32 %v533_v48, %v358_v56 }
   0xe   :  { %293 = vmatpush.bf16.msrb.mxu0 %v511_v11  ;;  %188 = vmatpush.bf16.msra.mxu1 %v499_v14  ;;  %v360_v2 = vadd.f32 %v533_v48, %v359_v61 }
   0xf   :  { %516 = vmatpush.bf16.msra.mxu3 %v499_v14  ;;  %524 = vmatpush.bf16.msra.mxu2 %v509_v17 }
  0x10   :  { %v364_v10 = vsel %vm362_vm1, %v533_v48, %v360_v2 }
  0x12   :  { %294 = vmatpush.bf16.msrb.mxu0 %v510_v13  ;;  %189 = vmatpush.bf16.msra.mxu1 %v498_v18 }
  0x13   :  { %517 = vmatpush.bf16.msra.mxu3 %v498_v18  ;;  %525 = vmatpush.bf16.msra.mxu2 %v508_v21 }
  0x16   :  { %295 = vmatpush.bf16.msrb.mxu0 %v509_v17  ;;  %190 = vmatpush.bf16.msra.mxu1 %v497_v25 }
  0x17   :  { %526 = vmatpush.bf16.msra.mxu2 %v507_v23  ;;  %518 = vmatpush.bf16.msra.mxu3 %v497_v25 }
  0x19   :  { %420 = vmatmul.msk.bf16.gmra.mxu0 %vm74_vm0, %v48_v22 }
  0x1a   :  { %296 = vmatpush.bf16.msrb.mxu0 %v508_v21  ;;  %191 = vmatpush.bf16.msra.mxu1 %v496_v28 }
  0x1b   :  { %527 = vmatpush.bf16.msra.mxu2 %v506_v24  ;;  %519 = vmatpush.bf16.msra.mxu3 %v496_v28 }
  0x1e   :  { %297 = vmatpush.bf16.msrb.mxu0 %v507_v23  ;;  %192 = vmatpush.bf16.msra.mxu1 %v495_v29 }
  0x1f   :  { %528 = vmatpush.bf16.msra.mxu2 %v505_v26  ;;  %520 = vmatpush.bf16.msra.mxu3 %v495_v29 }
  0x22   :  { %298 = vmatpush.bf16.msrb.mxu0 %v506_v24  ;;  %305 = vmatmul.bf16.vlgmr.msra.gmra.mxu2 %v504_v30 }
  0x26   :  { %299 = vmatpush.bf16.msrb.mxu0 %v505_v26 }
  0x29   :  { %300 = vmatmul.bf16.vlgmr.msrb.gmra.mxu0 %v503_v27 }
  0x86   :  { %v90_v31 = vpop.f32.mrf.mxu0 }
  0x8e   :  { %v92_v32 = vpop.f32.mrf.mxu0 }
  0x8f   :  { %v115_v33 = vpack.c.bf16 %v92_v32, %v90_v31 }
  0x91   :  { %193 = vmatmul.bf16.vlgmr.msra.gmra.mxu1 %v115_v33 }
  0x96   :  { %v95_v34 = vpop.f32.mrf.mxu0 }
  0x9e   :  { %v97_v35 = vpop.f32.mrf.mxu0 }
  0x9f   :  { %v116_v36 = vpack.c.bf16 %v97_v35, %v95_v34 }
  0xa1   :  { %198 = vmatmul.bf16.vlgmr.msra.gmra.mxu3 %v116_v36 }
  0xa5   :  { %v306_v57 = vpop.f32.mrf.mxu2 }
  0xa6   :  { %v301_v38 = vpop.f32.mrf.mxu0  ;;  %v307_v63 = vadd.f32 %v530_v37, %v306_v57 }
  0xa7   :  { %v302_v39 = vadd.f32 %v530_v37, %v301_v38 }
  0xa8   :  { %v313_v6 = vmax.f32 %v307_v63, 0.0 }
  0xa9   :  { %v311_v42 = vmax.f32 %v302_v39, 0.0 }
  0xad   :  { %v308_v7 = vpop.f32.mrf.mxu2 }
  0xae   :  { %v303_v46 = vpop.f32.mrf.mxu0  ;;  %v309_v13 = vadd.f32 %v530_v37, %v308_v7 }
  0xaf   :  { %v304_v49 = vadd.f32 %v530_v37, %v303_v46 }
  0xb0   :  { %v314_v20 = vmax.f32 %v309_v13, 0.0 }
  0xb1   :  { %v312_v53 = vmax.f32 %v304_v49, 0.0 }
 0x10e   :  { %v194_v41 = vpop.f32.mrf.mxu1 }
 0x10f   :  { %v195_v43 = vadd.f32 %v531_v40, %v194_v41 }
 0x111   :  { %v204_v45 = vmax.f32 %v195_v43, 0.0 }
 0x113   :  { %v315_v47 = vadd.f32 %v311_v42, %v204_v45 }
 0x115   :  { %319 = vst [vmem:[%s683_s7] sm:$0xff] %v315_v47 }
 0x116   :  { %v196_v50 = vpop.f32.mrf.mxu1 }
 0x117   :  { %v197_v51 = vadd.f32 %v531_v40, %v196_v50 }
 0x119   :  { %v205_v54 = vmax.f32 %v197_v51, 0.0 }
 0x11b   :  { %v316_v55 = vadd.f32 %v312_v53, %v205_v54 }
 0x11d   :  { %320 = vst [vmem:[%s683_s7 + $0x8] sm:$0xff] %v316_v55  ;;  %v346_v58 = vadd.f32 %v316_v55, %v315_v47 }
 0x11f   :  { %v349_v59 = vrot.slane %v346_v58, 4 }
 0x121   :  { %v350_v62 = vadd.f32 %v349_v59, %v346_v58 }
 0x123   :  { %v351_v0 = vrot.slane %v350_v62, 2 }
 0x124   :  { %v199_v3 = vpop.f32.mrf.mxu3 }
 0x125   :  { %v352_v4 = vadd.f32 %v351_v0, %v350_v62  ;;  %v200_v5 = vadd.f32 %v531_v40, %v199_v3 }
 0x127   :  { %v353_v8 = vrot.slane %v352_v4, 1  ;;  %v206_v9 = vmax.f32 %v200_v5, 0.0 }
 0x129   :  { %v354_v11 = vadd.f32 %v353_v8, %v352_v4  ;;  %v317_v12 = vadd.f32 %v313_v6, %v206_v9 }
 0x12b   :  { %v370_v14 = vmul.f32 %v364_v10, %v354_v11  ;;  %v393_v15 = vsel %vm392_vm2, %v354_v11, 0.0  ;;  %321 = vst [vmem:[%s683_s7 + $0x10] sm:$0xff] %v317_v12 }
 0x12c   :  { %394 = vst [vmem:[%s684_s8] sm:$0xff] %v393_v15  ;;  %v201_v16 = vpop.f32.mrf.mxu3 }
 0x12d   :  { %v371_v17 = vsub.f32 %v315_v47, %v370_v14  ;;  %v372_v18 = vsub.f32 %v316_v55, %v370_v14  ;;  %v202_v19 = vadd.f32 %v531_v40, %v201_v16 }
 0x12f   :  { %v379_v21 = vmul.f32 %v371_v17, %v371_v17  ;;  %v380_v22 = vmul.f32 %v372_v18, %v372_v18  ;;  %v207_v23 = vmax.f32 %v202_v19, 0.0 }
 0x131   :  { %v383_v24 = vadd.f32 %v380_v22, %v379_v21  ;;  %v318_v25 = vadd.f32 %v314_v20, %v207_v23 }
 0x133   :  { %v386_v26 = vrot.slane %v383_v24, 4  ;;  %322 = vst [vmem:[%s683_s7 + $0x18] sm:$0xff] %v318_v25 }
 0x135   :  { %v387_v27 = vadd.f32 %v386_v26, %v383_v24 }
 0x137   :  { %v388_v28 = vrot.slane %v387_v27, 2 }
 0x139   :  { %v389_v29 = vadd.f32 %v388_v28, %v387_v27 }
 0x13b   :  { %v390_v30 = vrot.slane %v389_v29, 1 }
 0x13d   :  { %v391_v31 = vadd.f32 %v390_v30, %v389_v29 }
 0x13f   :  { %v395_v32 = vsel %vm392_vm2, %v391_v31, 0.0 }
 0x140   :  { %396 = vst [vmem:[%s685_s9] sm:$0xff] %v395_v32 }

</bundles_post_ra>
